<compile_context>
chip_gen: v6e
topology: v6e:2x2x1
jax: 0.10.0
libtpu: 0.0.40
codegen_flags: <defaults>
</compile_context>

<pallas_src>
import functools

import jax
import jax.numpy as jnp
from jax.experimental import pallas as pl
from jax.experimental.pallas import tpu as pltpu


_ONEHOT_VOCAB_LIMIT = 2048   # beyond this the one-hot gather's O(TBL*V*E) MACs dominate


def _round_up(x, m):
    return ((x + m - 1) // m) * m


def _vmem_capacity_bytes():
    """Per-TensorCore VMEM capacity; conservative v7x default if the query fails."""
    try:
        return int(pltpu.get_tpu_info().vmem_capacity_bytes)
    except Exception:
        return 64 << 20


def _choose_batch_tile(batch, l_pad, rows_target):
    """Batch rows (TB) per grid step.

    Aims for ~rows_target MXU M-rows per step, keeps the tile a multiple of 8
    sublanes whenever the grid has more than one step, and caps TB so there are
    >= 2 grid steps whenever the batch is big enough — dimension_semantics
    ("parallel",) shards that axis across v7x's two TensorCores.
    """
    if batch < 16:
        # Tiny batch: single step, whole batch resident, no padding / pipeline overhead.
        return batch, batch
    tb = max(8, (max(1, rows_target // l_pad) // 8) * 8)
    half = _round_up((batch + 1) // 2, 8)
    tb = min(tb, half)                       # guarantee >= 2 grid steps
    return tb, _round_up(batch, tb)


def _attend_and_classify(emb, w1_ref, b1_ref, att_ref, wfc_ref, bfc_ref,
                         out_ref, *, seq_len, tb, l_pad):
    """Shared fc1/att/softmax/pool/classifier body. emb: (TB*Lp, E)."""
    tbl = tb * l_pad
    embed = emb.shape[1]

    # ---- fc1 + relu: bf16 operands on the MXU, f32 accumulation
    h = jnp.dot(emb.astype(w1_ref.dtype), w1_ref[...],
                preferred_element_type=jnp.float32) + b1_ref[...]
    h = jnp.maximum(h, 0.0)                                         # (TBL, 2E)

    # ---- attention logits over the hidden dim (VPU mul + lane reduce)
    logit = jnp.sum(h * att_ref[...], axis=1, keepdims=True)        # (TBL, 1) f32

    if seq_len != l_pad:                 # static branch: mask padded seq positions
        pos = jax.lax.broadcasted_iota(jnp.int32, (tbl, 1), 0) % l_pad
        logit = jnp.where(pos < seq_len, logit, -1e30)               # f32: no -inf saturation

    # ---- per-sequence softmax over L (leading-dim split; l_pad % 8 == 0 or single block)
    logit3 = logit.reshape(tb, l_pad, 1)
    m = jnp.max(logit3, axis=1, keepdims=True)
    p = jnp.exp(logit3 - m)
    denom = jnp.sum(p, axis=1, keepdims=True)
    scores = (p * pl.reciprocal(denom, approx=True)).reshape(tbl, 1)  # EUP reciprocal

    # ---- attention pooling: sublane-group reduce (was a 1/TB-dense matmul)
    pooled = (emb.astype(jnp.float32) * scores).reshape(tb, l_pad, embed).sum(axis=1)

    # ---- classifier; output lane-padded to Cpad -> dense vst
    out_ref[...] = (jnp.dot(pooled.astype(wfc_ref.dtype), wfc_ref[...],
                            preferred_element_type=jnp.float32)
                    + bfc_ref[...]).astype(out_ref.dtype)


def _fused_gather_kernel(tok_ref, table_ref, w1_ref, b1_ref, att_ref,
                         wfc_ref, bfc_ref, out_ref, *, seq_len):
    """Small-vocab path: embedding gather fused as a one-hot bf16 matmul."""
    tbl = tok_ref.shape[0]               # TB * Lp
    tb = out_ref.shape[0]
    l_pad = tbl // tb
    vocab = table_ref.shape[0]

    tok = tok_ref[...]                                               # (TBL, 1) i32
    onehot = jax.lax.broadcasted_iota(jnp.int32, (tbl, vocab), 1) == tok
    # exact gather: one-hot rows are 0/1, bf16-representable; f32 accumulation
    emb = jnp.dot(onehot.astype(table_ref.dtype), table_ref[...],
                  preferred_element_type=jnp.float32)                # (TBL, E)
    _attend_and_classify(emb, w1_ref, b1_ref, att_ref, wfc_ref, bfc_ref,
                         out_ref, seq_len=seq_len, tb=tb, l_pad=l_pad)


def _precomputed_emb_kernel(emb_ref, w1_ref, b1_ref, att_ref,
                            wfc_ref, bfc_ref, out_ref, *, seq_len):
    """Large-vocab path: embeddings gathered wrapper-side, streamed per tile."""
    tb = out_ref.shape[0]
    l_pad = emb_ref.shape[0] // tb
    _attend_and_classify(emb_ref[...], w1_ref, b1_ref, att_ref, wfc_ref, bfc_ref,
                         out_ref, seq_len=seq_len, tb=tb, l_pad=l_pad)


def prepare_params(params, compute_dtype=jnp.bfloat16):
    """One-time (hoisted) weight prep: transposes, bias reshapes, lane padding.

    compute_dtype=bfloat16: all three MXU generations are bf16-native (f32
    matmul is multi-pass emulation); accumulation stays f32 in the kernel.
    """
    emb_table = params["embedding"]
    n_classes = int(params["fc_b"].shape[-1])
    embed = int(emb_table.shape[1])
    c_pad = _round_up(n_classes, 128)
    wfc = jnp.zeros((embed, c_pad), jnp.float32).at[:, :n_classes].set(params["fc_w"].T)
    bfc = jnp.zeros((1, c_pad), jnp.float32).at[:, :n_classes].set(params["fc_b"])
    return {
        "table": emb_table.astype(compute_dtype),            # (V, E)
        "w1": params["fc1_w"].T.astype(compute_dtype),        # (E, 2E)
        "b1": params["fc1_b"][None, :].astype(jnp.float32),   # (1, 2E)
        "att": params["att"][None, :].astype(jnp.float32),    # (1, 2E)
        "wfc": wfc.astype(compute_dtype),                      # (E, Cpad)
        "bfc": bfc,                                            # (1, Cpad) f32
        "num_classes": n_classes,
    }


def _const2d(shape):
    """Constant-index-map operand: single-buffered (no point double-buffering a
    block that never changes across grid steps — halves its VMEM footprint)."""
    return pl.BlockSpec(shape, lambda b: (0, 0), pipeline_mode=pl.Buffered(1))


def model_forward(x, prep, *, force_xla_gather=False):
    """x = (tokens, seq_len, bigram_tokens); only x[0] is needed (x[2] feeds a dead branch)."""
    tokens = x[0].astype(jnp.int32)                            # (B, L)
    batch, seq = tokens.shape
    table = prep["table"]
    vocab, embed = table.shape
    hidden = prep["w1"].shape[1]
    c_pad = prep["wfc"].shape[1]
    n_classes = prep["num_classes"]

    # ---- generation-aware knobs (v7x: 64 MiB VMEM, v5e/v6e: 128 MiB)
    vmem_cap = _vmem_capacity_bytes()
    rows_target = 1024 if vmem_cap >= (96 << 20) else 512
    vmem_limit = int(max(32 << 20, min(vmem_cap - (16 << 20), 100 << 20)))

    l_pad = _round_up(seq, 8)
    if l_pad != seq:
        tokens = jnp.pad(tokens, ((0, 0), (0, l_pad - seq)))   # padded positions masked in-kernel
    tb, b_pad = _choose_batch_tile(batch, l_pad, rows_target)
    if b_pad != batch:
        # Padded batch rows reuse token id 0 (a real vocab row); their outputs
        # are sliced off below and must never be read.
        tokens = jnp.pad(tokens, ((0, b_pad - batch), (0, 0)))
    tbl = tb * l_pad

    kernel_common = dict(seq_len=seq)
    weight_specs = [
        _const2d((embed, hidden)),      # fc1 weight (pre-transposed, bf16)
        _const2d((1, hidden)),          # fc1 bias (f32)
        _const2d((1, hidden)),          # att vector (f32)
        _const2d((embed, c_pad)),       # fc weight (pre-T, lane-padded, bf16)
        _const2d((1, c_pad)),           # fc bias (lane-padded, f32)
    ]
    weight_args = (prep["w1"], prep["b1"], prep["att"], prep["wfc"], prep["bfc"])

    table_bytes = vocab * embed * table.dtype.itemsize
    use_fused_gather = ((not force_xla_gather)
                        and vocab <= _ONEHOT_VOCAB_LIMIT
                        and table_bytes <= vmem_cap // 4)

    if use_fused_gather:
        # Small vocab: table resident in VMEM, gather fused as one-hot matmul.
        tok_col = tokens.reshape(b_pad * l_pad, 1)
        kernel = functools.partial(_fused_gather_kernel, **kernel_common)
        in_specs = [pl.BlockSpec((tbl, 1), lambda b: (b, 0)),          # token ids per tile
                    _const2d((vocab, embed))] + weight_specs            # resident table
        args = (tok_col, table) + weight_args
    else:
        # Large vocab: gather outside the kernel, stream embeddings per tile.
        # TODO(synk): replace with an in-kernel DMA row gather (scalar-prefetched
        # token ids in SMEM + memory_space=pl.ANY table + double-buffered
        # pltpu.make_async_copy) to avoid the HBM round-trip of (B,L,E).
        emb = jnp.take(table, tokens, axis=0).reshape(b_pad * l_pad, embed)
        kernel = functools.partial(_precomputed_emb_kernel, **kernel_common)
        in_specs = [pl.BlockSpec((tbl, embed), lambda b: (b, 0))] + weight_specs
        args = (emb,) + weight_args

    grid_spec = pltpu.PrefetchScalarGridSpec(
        num_scalar_prefetch=0,
        grid=(b_pad // tb,),
        in_specs=in_specs,
        out_specs=pl.BlockSpec((tb, c_pad), lambda b: (b, 0)),
    )

    out = pl.pallas_call(
        kernel,
        out_shape=jax.ShapeDtypeStruct((b_pad, c_pad), jnp.float32),
        grid_spec=grid_spec,
        compiler_params=pltpu.CompilerParams(
            dimension_semantics=("parallel",),
            vmem_limit_bytes=vmem_limit),
    )(*args)
    return out[:batch, :n_classes]                              # (B, C)


def _reference_forward(x, params):
    """Pure-JAX f32 reference mirroring the torch forward (eval mode)."""
    emb = params["embedding"][x[0]].astype(jnp.float32)
    h = jax.nn.relu(jnp.einsum("ble,oe->blo", emb, params["fc1_w"]) + params["fc1_b"])
    logit = jnp.sum(h * params["att"][None, None, :], axis=2)
    scores = jax.nn.softmax(logit, axis=1)
    pooled = jnp.sum(emb * scores[:, :, None], axis=1)
    return jnp.einsum("be,ce->bc", pooled, params["fc_w"]) + params["fc_b"]


def make_params(key, n_vocab, embed, num_classes):
    ks = jax.random.split(key, 6)
    emb_table = jax.random.normal(ks[0], (n_vocab, embed), jnp.float32) * 0.1
    emb_table = emb_table.at[n_vocab - 1].set(0.0)  # padding_idx row zeroed like nn.Embedding
    return {
        "embedding": emb_table,
        "fc1_w": jax.random.normal(ks[1], (2 * embed, embed), jnp.float32) * 0.1,
        "fc1_b": jax.random.normal(ks[2], (2 * embed,), jnp.float32) * 0.1,
        "att": jax.random.normal(ks[3], (2 * embed,), jnp.float32) * 0.1,
        "fc_w": jax.random.normal(ks[4], (num_classes, embed), jnp.float32) * 0.1,
        "fc_b": jax.random.normal(ks[5], (num_classes,), jnp.float32) * 0.1,
        # bifc weights omitted: that branch is dead code in the reference forward.
    }


if __name__ == "__main__":
    B, L = 2, 8
    n_vocab, embed, num_classes = 50, 32, 4

    key = jax.random.PRNGKey(0)
    k_tok0, k_tok2, k_par = jax.random.split(key, 3)

    tokens0 = jax.random.randint(k_tok0, (B, L), 0, n_vocab, dtype=jnp.int32)
    seq_len = jnp.full((B,), L, dtype=jnp.int32)                 # x[1], unused (matches reference)
    tokens2 = jax.random.randint(k_tok2, (B, L), 0, n_vocab, dtype=jnp.int32)  # x[2], dead branch
    x = (tokens0, seq_len, tokens2)

    params = make_params(k_par, n_vocab, embed, num_classes)
    prep = prepare_params(params)          # bf16 matmul operands (one-time, hoisted)

    ref = _reference_forward(x, params)

    # fused-gather path (vocab small enough for a VMEM-resident table)
    out = model_forward(x, prep)
    jax.block_until_ready(out)
    assert out.shape == (B, num_classes)
    # tolerance relaxed for bf16 weights + approx softmax reciprocal
    assert jnp.allclose(out, ref, atol=2e-2, rtol=2e-2), (out, ref)

    # exercise the large-vocab fallback path (wrapper-side gather, same attention kernel)
    out2 = model_forward(x, prep, force_xla_gather=True)
    jax.block_until_ready(out2)
    assert jnp.allclose(out2, ref, atol=2e-2, rtol=2e-2), (out2, ref)

    print("KERNEL_OK")
</pallas_src>

<mosaic_0001>
module attributes {stable_mosaic.version = 11 : i64} {
  func.func @_fused_gather_kernel(%arg0: i32, %arg1: memref<16x1xi32, #tpu.memory_space<vmem>>, %arg2: memref<50x32xbf16, #tpu.memory_space<vmem>>, %arg3: memref<32x64xbf16, #tpu.memory_space<vmem>>, %arg4: memref<1x64xf32, #tpu.memory_space<vmem>>, %arg5: memref<1x64xf32, #tpu.memory_space<vmem>>, %arg6: memref<32x128xbf16, #tpu.memory_space<vmem>>, %arg7: memref<1x128xf32, #tpu.memory_space<vmem>>, %arg8: memref<2x128xf32, #tpu.memory_space<vmem>>) attributes {dimension_semantics = [#tpu.dimension_semantics<parallel>], iteration_bounds = array<i64: 1>, scalar_prefetch = 0 : i64, scratch_operands = 0 : i64, tpu.core_type = #tpu.core_type<tc>, window_params = [{transform_indices = @transform_0, window_bounds = array<i64: 16, 1>}, {pipeline_mode = #tpu.pipeline_mode<synchronous>, transform_indices = @transform_1, window_bounds = array<i64: 50, 32>}, {pipeline_mode = #tpu.pipeline_mode<synchronous>, transform_indices = @transform_2, window_bounds = array<i64: 32, 64>}, {pipeline_mode = #tpu.pipeline_mode<synchronous>, transform_indices = @transform_3, window_bounds = array<i64: 1, 64>}, {pipeline_mode = #tpu.pipeline_mode<synchronous>, transform_indices = @transform_4, window_bounds = array<i64: 1, 64>}, {pipeline_mode = #tpu.pipeline_mode<synchronous>, transform_indices = @transform_5, window_bounds = array<i64: 32, 128>}, {pipeline_mode = #tpu.pipeline_mode<synchronous>, transform_indices = @transform_6, window_bounds = array<i64: 1, 128>}, {transform_indices = @transform_7, window_bounds = array<i64: 2, 128>}]} {
    %c0 = arith.constant 0 : index
    %c0_0 = arith.constant 0 : index
    %0 = vector.load %arg1[%c0, %c0_0] : memref<16x1xi32, #tpu.memory_space<vmem>>, vector<16x1xi32>
    %1 = tpu.iota {dimensions = array<i32: 1>} : vector<16x50xi32>
    %2 = vector.broadcast %0 : vector<16x1xi32> to vector<16x50xi32>
    %3 = arith.cmpi eq, %1, %2 : vector<16x50xi32>
    %4 = arith.extui %3 : vector<16x50xi1> to vector<16x50xi32>
    %5 = arith.sitofp %4 : vector<16x50xi32> to vector<16x50xf32>
    %6 = arith.truncf %5 : vector<16x50xf32> to vector<16x50xbf16>
    %c0_1 = arith.constant 0 : index
    %c0_2 = arith.constant 0 : index
    %7 = vector.load %arg2[%c0_1, %c0_2] : memref<50x32xbf16, #tpu.memory_space<vmem>>, vector<50x32xbf16>
    %cst = arith.constant dense<0.000000e+00> : vector<16x32xf32>
    %8 = tpu.matmul %6, %7, %cst {dimension_numbers = #tpu.dot_dimension_numbers<[1], [0], [0], [1], [0, 0, 1, 1], [], []>} : vector<16x50xbf16>, vector<50x32xbf16>, vector<16x32xf32> -> vector<16x32xf32>
    %9 = arith.truncf %8 : vector<16x32xf32> to vector<16x32xbf16>
    %c0_3 = arith.constant 0 : index
    %c0_4 = arith.constant 0 : index
    %10 = vector.load %arg3[%c0_3, %c0_4] : memref<32x64xbf16, #tpu.memory_space<vmem>>, vector<32x64xbf16>
    %cst_5 = arith.constant dense<0.000000e+00> : vector<16x64xf32>
    %11 = tpu.matmul %9, %10, %cst_5 {dimension_numbers = #tpu.dot_dimension_numbers<[1], [0], [0], [1], [0, 0, 1, 1], [], []>} : vector<16x32xbf16>, vector<32x64xbf16>, vector<16x64xf32> -> vector<16x64xf32>
    %c0_6 = arith.constant 0 : index
    %c0_7 = arith.constant 0 : index
    %12 = vector.load %arg4[%c0_6, %c0_7] : memref<1x64xf32, #tpu.memory_space<vmem>>, vector<1x64xf32>
    %13 = vector.broadcast %12 : vector<1x64xf32> to vector<16x64xf32>
    %14 = arith.addf %11, %13 : vector<16x64xf32>
    %cst_8 = arith.constant 0.000000e+00 : f32
    %15 = vector.broadcast %cst_8 : f32 to vector<16x64xf32>
    %16 = arith.maximumf %14, %15 : vector<16x64xf32>
    %c0_9 = arith.constant 0 : index
    %c0_10 = arith.constant 0 : index
    %17 = vector.load %arg5[%c0_9, %c0_10] : memref<1x64xf32, #tpu.memory_space<vmem>>, vector<1x64xf32>
    %18 = vector.broadcast %17 : vector<1x64xf32> to vector<16x64xf32>
    %19 = arith.mulf %16, %18 : vector<16x64xf32>
    %cst_11 = arith.constant dense<0.000000e+00> : vector<16xf32>
    %20 = vector.multi_reduction <add>, %19, %cst_11 [1] : vector<16x64xf32> to vector<16xf32>
    %21 = vector.shape_cast %20 : vector<16xf32> to vector<16x1xf32>
    %22 = vector.shape_cast %21 : vector<16x1xf32> to vector<2x8x1xf32>
    %cst_12 = arith.constant dense<0xFF800000> : vector<2x1xf32>
    %23 = vector.multi_reduction <maximumf>, %22, %cst_12 [1] : vector<2x8x1xf32> to vector<2x1xf32>
    %24 = vector.shape_cast %23 : vector<2x1xf32> to vector<2x1x1xf32>
    %25 = vector.broadcast %24 : vector<2x1x1xf32> to vector<2x8x1xf32>
    %26 = arith.subf %22, %25 : vector<2x8x1xf32>
    %27 = math.exp %26 : vector<2x8x1xf32>
    %cst_13 = arith.constant dense<0.000000e+00> : vector<2x1xf32>
    %28 = vector.multi_reduction <add>, %27, %cst_13 [1] : vector<2x8x1xf32> to vector<2x1xf32>
    %29 = vector.shape_cast %28 : vector<2x1xf32> to vector<2x1x1xf32>
    %30 = tpu.reciprocal %29 {approx = true} : vector<2x1x1xf32> -> vector<2x1x1xf32>
    %31 = vector.broadcast %30 : vector<2x1x1xf32> to vector<2x8x1xf32>
    %32 = arith.mulf %27, %31 : vector<2x8x1xf32>
    %33 = vector.shape_cast %32 : vector<2x8x1xf32> to vector<16x1xf32>
    %34 = vector.broadcast %33 : vector<16x1xf32> to vector<16x32xf32>
    %35 = arith.mulf %8, %34 : vector<16x32xf32>
    %36 = vector.shape_cast %35 : vector<16x32xf32> to vector<2x8x32xf32>
    %cst_14 = arith.constant dense<0.000000e+00> : vector<2x32xf32>
    %37 = vector.multi_reduction <add>, %36, %cst_14 [1] : vector<2x8x32xf32> to vector<2x32xf32>
    %38 = arith.truncf %37 : vector<2x32xf32> to vector<2x32xbf16>
    %c0_15 = arith.constant 0 : index
    %c0_16 = arith.constant 0 : index
    %39 = vector.load %arg6[%c0_15, %c0_16] : memref<32x128xbf16, #tpu.memory_space<vmem>>, vector<32x128xbf16>
    %cst_17 = arith.constant dense<0.000000e+00> : vector<2x128xf32>
    %40 = tpu.matmul %38, %39, %cst_17 {dimension_numbers = #tpu.dot_dimension_numbers<[1], [0], [0], [1], [0, 0, 1, 1], [], []>} : vector<2x32xbf16>, vector<32x128xbf16>, vector<2x128xf32> -> vector<2x128xf32>
    %c0_18 = arith.constant 0 : index
    %c0_19 = arith.constant 0 : index
    %41 = vector.load %arg7[%c0_18, %c0_19] : memref<1x128xf32, #tpu.memory_space<vmem>>, vector<1x128xf32>
    %42 = vector.broadcast %41 : vector<1x128xf32> to vector<2x128xf32>
    %43 = arith.addf %40, %42 : vector<2x128xf32>
    %c0_20 = arith.constant 0 : index
    %c0_21 = arith.constant 0 : index
    %44 = vector.load %arg8[%c0_20, %c0_21] : memref<2x128xf32, #tpu.memory_space<vmem>>, vector<2x128xf32>
    tpu.vector_store %arg8[%c0_20, %c0_21], %43 {strides = array<i32>} : memref<2x128xf32, #tpu.memory_space<vmem>>, vector<2x128xf32>,
    return
  }
  func.func @transform_0(%arg0: i32) -> (i32, i32) {
    %c0_i32 = arith.constant 0 : i32
    %c0_i32_0 = arith.constant 0 : i32
    return %arg0, %c0_i32 : i32, i32
  }
  func.func @transform_1(%arg0: i32) -> (i32, i32) {
    %c0_i32 = arith.constant 0 : i32
    %c0_i32_0 = arith.constant 0 : i32
    %c0_i32_1 = arith.constant 0 : i32
    return %c0_i32, %c0_i32_0 : i32, i32
  }
  func.func @transform_2(%arg0: i32) -> (i32, i32) {
    %c0_i32 = arith.constant 0 : i32
    %c0_i32_0 = arith.constant 0 : i32
    %c0_i32_1 = arith.constant 0 : i32
    return %c0_i32, %c0_i32_0 : i32, i32
  }
  func.func @transform_3(%arg0: i32) -> (i32, i32) {
    %c0_i32 = arith.constant 0 : i32
    %c0_i32_0 = arith.constant 0 : i32
    %c0_i32_1 = arith.constant 0 : i32
    return %c0_i32, %c0_i32_0 : i32, i32
  }
  func.func @transform_4(%arg0: i32) -> (i32, i32) {
    %c0_i32 = arith.constant 0 : i32
    %c0_i32_0 = arith.constant 0 : i32
    %c0_i32_1 = arith.constant 0 : i32
    return %c0_i32, %c0_i32_0 : i32, i32
  }
  func.func @transform_5(%arg0: i32) -> (i32, i32) {
    %c0_i32 = arith.constant 0 : i32
    %c0_i32_0 = arith.constant 0 : i32
    %c0_i32_1 = arith.constant 0 : i32
    return %c0_i32, %c0_i32_0 : i32, i32
  }
  func.func @transform_6(%arg0: i32) -> (i32, i32) {
    %c0_i32 = arith.constant 0 : i32
    %c0_i32_0 = arith.constant 0 : i32
    %c0_i32_1 = arith.constant 0 : i32
    return %c0_i32, %c0_i32_0 : i32, i32
  }
  func.func @transform_7(%arg0: i32) -> (i32, i32) {
    %c0_i32 = arith.constant 0 : i32
    %c0_i32_0 = arith.constant 0 : i32
    return %arg0, %c0_i32 : i32, i32
  }
}

</mosaic_0001>

<bundles_post_ra>
// kernel: tpu_custom_call.1
= control target key start
LH: loop header
LB: loop body
LE: loop exit
PB: predicated region body
PF: predicated region fallthrough
CT: control target
= control target key end

     0   :  { %v447_v1 = vmov 0   ;;  %v448_v2 = vmov 0.0   ;;  %vm77_vm0 = vcmask 1040384   ;;  %vm449_vm1 = vmmov 0   ;;  %s561_s0 = inlined_call_operand.vmem [shape: s32[16,1], index: 0, kind: input, shape index: {}]   ;;  %s562_s1 = inlined_call_operand.vmem [shape: bf16[50,32], index: 1, kind: input, shape index: {}]   ;;  %s563_s2 = inlined_call_operand.vmem [shape: bf16[32,64], index: 2, kind: input, shape index: {}]   ;;  %s564_s3 = inlined_call_operand.vmem [shape: f32[1,64], index: 3, kind: input, shape index: {}]   ;;  %s565_s4 = inlined_call_operand.vmem [shape: f32[1,64], index: 4, kind: input, shape index: {}]   ;;  %s566_s5 = inlined_call_operand.vmem [shape: bf16[32,128], index: 5, kind: input, shape index: {}]   ;;  %s567_s6 = inlined_call_operand.vmem [shape: f32[1,128], index: 6, kind: input, shape index: {}]   ;;  %s568_s7 = inlined_call_operand.hbm [shape: f32[2,128], index: 7, kind: output, shape index: {}]  }
   0x1   :  { %v28_v0 = vld [vmem:[%s561_s0] sm:$0xff]  ;;  %408 = vset.pattern.permute.xlu0 %v447_v1  ;;  %376 = vmatprep.subr.bf16.mxu0 %v448_v2  ;;  %v409_v3 = vld [vmem:[%s562_s1 + $0x18] ss:$0 sps:$4 sm:$0x11]   ;;  %v29_v4 = vld [vmem:[%s561_s0 + $0x8] sm:$0xff] }
   0x2   :  { %33 = vperm.xlu0 %408, %v28_v0   ;;  %388 = vmatprep.subr.bf16.mxu1 %v448_v2  ;;  %v79_v5 = vsel %vm77_vm0, %v409_v3, 0  ;;  %v410_v6 = vld [vmem:[%s562_s1 + $0x10] sm:$0xff]  }
   0x3   :  { %377 = vmatpush3.bf16.msra.mxu0 %v79_v5  ;;  %384 = vmatprep.mubr.msk.bf16.mxu0 %vm449_vm1, %v448_v2 }
   0x4   :  { %378 = vmatprep.subr.bf16.mxu0 %v448_v2  ;;  %392 = vmatprep.mubr.msk.bf16.mxu1 %vm449_vm1, %v448_v2 }
   0x6   :  { %36 = vperm.xlu0 %408, %v29_v4  }
   0x7   :  { %12 = vsyncpa [#allocation3], 0  ;;  %379 = vmatpush3.bf16.msra.mxu0 %v410_v6  ;;  %v411_v7 = vld [vmem:[%s562_s1 + $0x8] sm:$0xff]   ;;  %v412_v8 = vld [vmem:[%s562_s1] sm:$0xff]   ;;  %v30_v9 = vlaneseq  ;;  %vm73_vm4 = vcmask 408576   ;;  %vm146_vm5 = vcmask 261120  }
   0x8   :  { %380 = vmatprep.subr.bf16.mxu0 %v448_v2  ;;  %v413_v16 = vld [vmem:[%s563_s2 + $0x8] sm:$0xff]   ;;  %v414_v17 = vld [vmem:[%s563_s2] sm:$0xff]   ;;  %vm202_vm6 = vcmask 523264   ;;  %vm276_vm7 = vcmask 1041409   ;;  %s450_s21 = smov [#allocation2]  }
   0x9   :  { %v31_v10 = vand.u32 127, %v30_v9  ;;  %389 = vmatpush3.bf16.msra.mxu1 %v413_v16  ;;  %v356_v23 = vld [vmem:[%s564_s3] ss:$0 sm:$0xff]  ;;  %v415_v37 = vld [vmem:[%s566_s5 + $0x8] sm:$0xff]   ;;  %s341_s22 = sshll.u32 %s450_s21, 4  ;;  %s342_s22 = int_to_ptr.vmem [resolvable:$true] %s341_s22 }
   0xa   :  { %390 = vmatprep.subr.bf16.mxu1 %v448_v2  ;;  %v360_v27 = vld [vmem:[%s565_s4] ss:$0 sm:$0xff]  ;;  %s425_s23 = scalar_lea.vmem %s342_s22, 32  ;;  %p430_p1 = scmp.lt.s32.totalorder %s342_s22, %s342_s22 }
   0xb   :  { %381 = vmatpush3.bf16.msra.mxu0 %v411_v7  ;;  %v416_v38 = vld [vmem:[%s566_s5] sm:$0xff]   ;;  %p426_p0 = scmp.ne.s32.totalorder %s342_s22, %s425_s23  ;;  %p431_p2 = scmp.lt.s32.totalorder %s425_s23, %s425_s23 }
   0xc   :  { %382 = vmatprep.subr.bf16.mxu0 %v448_v2 }
   0xd   :  { %391 = vmatpush3.bf16.msra.mxu1 %v414_v17  ;;  %p432_p3 = por %p431_p2, %p430_p1 }
   0xe   :  { %396 = vmatprep.subr.bf16.mxu1 %v448_v2 }
   0xf   :  { %383 = vmatpush3.bf16.msra.mxu0 %v412_v8  ;;  %p433_p4 = pnand %p432_p3, %p426_p0 }
  0x7d   :  { %v34_v11 = vpop.permute.xlu0 %33 }
  0x7e   :  { %vm38_vm2 = vcmp.eq.s32.totalorder %v31_v10, %v34_v11 }
  0x7f   :  { %v349_v13 = vsel %vm38_vm2, 1.0, %v448_v2 }
  0x81   :  { %v37_v12 = vpop.permute.xlu0 %36 }
  0x82   :  { %vm39_vm3 = vcmp.eq.s32.totalorder %v31_v10, %v37_v12 }
  0x83   :  { %v350_v14 = vsel %vm39_vm3, 1.0, %v448_v2 }
  0x84   :  { %v44_v15 = vpack.c.bf16 %v350_v14, %v349_v13 }
  0x86   :  { %385 = vmatmul.mubr.msk.bf16.vlgmr.msra.gmra.mxu0 %vm73_vm4, %v44_v15 }
 0x146   :  { %v528_v18 = vpop.f32.mrf.mxu0 }
 0x148   :  { %v386_v19 = vpop.f32.mrf.mxu0 }
 0x14a   :  { %v530_v20 = vpop.f32.mrf.mxu0 }
 0x14b   :  { %v122_v21 = vpack.c.bf16 %v530_v20, %v528_v18 }
 0x14c   :  { %v387_v22 = vpop.f32.mrf.mxu0 }
 0x14d   :  { %393 = vmatmul.mubr.msk.bf16.vlgmr.msra.gmra.mxu1 %vm146_vm5, %v122_v21 }
 0x14e   :  { %400 = vmatprep.mubr.msk.bf16.mxu1 %vm449_vm1, %v448_v2  ;;  %397 = vmatpush3.bf16.msra.mxu1 %v415_v37 }
 0x14f   :  { %398 = vmatprep.subr.bf16.mxu1 %v448_v2 }
 0x152   :  { %399 = vmatpush3.bf16.msra.mxu1 %v416_v38 }
 0x20d   :  { %v184_v24 = vpop.f32.mrf.mxu1 }
 0x20e   :  { %v185_v25 = vadd.f32 %v356_v23, %v184_v24 }
 0x20f   :  { %v394_v26 = vpop.f32.mrf.mxu1 }
 0x210   :  { %v191_v28 = vmax.f32 %v185_v25, 0.0 }
 0x211   :  { %v187_v29 = vpop.f32.mrf.mxu1 }
 0x212   :  { %v188_v30 = vadd.f32 %v356_v23, %v187_v29  ;;  %v200_v31 = vmul.f32 %v360_v27, %v191_v28 }
 0x213   :  { %v395_v32 = vpop.f32.mrf.mxu1 }
 0x214   :  { %v192_v33 = vmax.f32 %v188_v30, 0.0  ;;  %v203_v34 = vsel %vm202_vm6, %v200_v31, 0.0 }
 0x215   :  { %204 = vadd.xlane.f32.xlu1 %v203_v34 }
 0x216   :  { %v201_v35 = vmul.f32 %v360_v27, %v192_v33  ;;  %v361_v33 = vld [vmem:[%s567_s6] ss:$0 sm:$0xff] }
 0x218   :  { %v206_v36 = vsel %vm202_vm6, %v201_v35, 0.0 }
 0x219   :  { %207 = vadd.xlane.f32.xlu1 %v206_v36 }
 0x29e   :  { %v205_v39 = vpop.xlane.xlu1 %204 }
 0x29f   :  { %v209_v40 = vrot.slane %v205_v39, 4 }
 0x2a1   :  { %v210_v41 = vmax.f32 %v205_v39, %v209_v40 }
 0x2a2   :  { %v208_v42 = vpop.xlane.xlu1 %207 }
 0x2a3   :  { %v211_v43 = vrot.slane %v210_v41, 2  ;;  %v215_v44 = vrot.slane %v208_v42, 4 }
 0x2a5   :  { %v212_v45 = vmax.f32 %v210_v41, %v211_v43  ;;  %v216_v46 = vmax.f32 %v208_v42, %v215_v44 }
 0x2a7   :  { %v213_v47 = vrot.slane %v212_v45, 1  ;;  %v217_v48 = vrot.slane %v216_v46, 2 }
 0x2a9   :  { %v214_v49 = vmax.f32 %v212_v45, %v213_v47  ;;  %v218_v50 = vmax.f32 %v216_v46, %v217_v48 }
 0x2ab   :  { %v221_v51 = vsub.f32 %v205_v39, %v214_v49  ;;  %v219_v52 = vrot.slane %v218_v50, 1 }
 0x2ad   :  { %v223_v53 = vmul.f32 1.442695, %v221_v51  ;;  %v220_v54 = vmax.f32 %v218_v50, %v219_v52 }
 0x2af   :  { %417 = vpow2.f32 %v223_v53  ;;  %v222_v55 = vsub.f32 %v208_v42, %v220_v54 }
 0x2b1   :  { %v225_v56 = vmul.f32 1.442695, %v222_v55 }
 0x2b3   :  { %419 = vpow2.f32 %v225_v56 }
 0x2bc   :  { %v418_v57 = vpop.eup %417 }
 0x2bd   :  { %v227_v58 = vrot.slane %v418_v57, 4 }
 0x2bf   :  { %v228_v59 = vadd.f32 %v418_v57, %v227_v58 }
 0x2c0   :  { %v420_v60 = vpop.eup %419 }
 0x2c1   :  { %v229_v61 = vrot.slane %v228_v59, 2  ;;  %v233_v62 = vrot.slane %v420_v60, 4 }
 0x2c3   :  { %v230_v63 = vadd.f32 %v229_v61, %v228_v59  ;;  %v234_v0 = vadd.f32 %v420_v60, %v233_v62 }
 0x2c5   :  { %v231_v1 = vrot.slane %v230_v63, 1  ;;  %v235_v2 = vrot.slane %v234_v0, 2 }
 0x2c7   :  { %v232_v3 = vadd.f32 %v231_v1, %v230_v63  ;;  %v236_v4 = vadd.f32 %v235_v2, %v234_v0 }
 0x2c9   :  { %421 = vrcp.f32 %v232_v3  ;;  %v237_v5 = vrot.slane %v236_v4, 1 }
 0x2cb   :  { %v238_v6 = vadd.f32 %v237_v5, %v236_v4 }
 0x2cd   :  { %423 = vrcp.f32 %v238_v6 }
 0x2d6   :  { %v422_v7 = vpop.eup %421 }
 0x2d7   :  { %v241_v8 = vmul.f32 %v422_v7, %v418_v57 }
 0x2d9   :  { %v243_v9 = vmul.f32 %v241_v8, %v528_v18 }
 0x2da   :  { %v424_v10 = vpop.eup %423 }
 0x2db   :  { %v242_v11 = vmul.f32 %v424_v10, %v420_v60  ;;  %v245_v12 = vsel %vm146_vm5, %v243_v9, 0.0 }
 0x2dc   :  { %v246_v13 = vrot.slane %v245_v12, 4 }
 0x2dd   :  { %v244_v14 = vmul.f32 %v242_v11, %v530_v20 }
 0x2de   :  { %v247_v15 = vadd.f32 %v246_v13, %v245_v12 }
 0x2df   :  { %v252_v16 = vsel %vm146_vm5, %v244_v14, 0.0 }
 0x2e0   :  { %v248_v17 = vrot.slane %v247_v15, 2  ;;  %v253_v19 = vrot.slane %v252_v16, 4 }
 0x2e2   :  { %v249_v21 = vadd.f32 %v248_v17, %v247_v15  ;;  %v254_v22 = vadd.f32 %v253_v19, %v252_v16 }
 0x2e4   :  { %v250_v23 = vrot.slane %v249_v21, 1  ;;  %v255_v24 = vrot.slane %v254_v22, 2 }
 0x2e6   :  { %v251_v25 = vadd.f32 %v250_v23, %v249_v21  ;;  %v256_v26 = vadd.f32 %v255_v24, %v254_v22 }
 0x2e8   :  { %v257_v27 = vrot.slane %v256_v26, 1  ;;  %v259_v28 = vpack.c.bf16 %v251_v25, %v251_v25 }
 0x2ea   :  { %v258_v18 = vadd.f32 %v257_v27, %v256_v26  ;;  %v274_v30 = vunpack.c.l.b16 %v259_v28 }
 0x2ec   :  { %v260_v29 = vpack.c.bf16 %v258_v18, %v258_v18 }
 0x2ee   :  { %v275_v31 = vunpack.c.l.b16 %v260_v29 }
 0x2f0   :  { %v277_v32 = vsel %vm276_vm7, %v275_v31, %v274_v30 }
 0x2f1   :  { %v278_v20 = vpack.c.b16 %v277_v32, %v277_v32 }
 0x2f3   :  { %401 = vmatmul.mubr.msk.bf16.vlgmr.msra.gmra.mxu1 %vm146_vm5, %v278_v20 }
 0x3b3   :  { %v328_v34 = vpop.f32.mrf.mxu1 }
 0x3b4   :  { %v329_v35 = vadd.f32 %v361_v33, %v328_v34 }
 0x3b5   :  { %v402_v36 = vpop.f32.mrf.mxu1 }
 0x3b6   :  { %334 = vst [vmem:[#allocation2] sm:$0x3] %v329_v35 }
 0x3b7   :  { %v331_v37 = vpop.f32.mrf.mxu1 }
 0x3b8   :  { %436 = shalt.err (!%p433_p4)
}
 0x3b9   :  { %344 = dma.vmem_to_hbm [thread:$0]  %s342_s22, 32, %s568_s7, [#allocation3]   ;;  %v403_v38 = vpop.f32.mrf.mxu1 }
 0x3ba   :  { %445 = dma.done.wait [#allocation3], 32  }
 0x3bb   :  { %446 = vsyncadd [#allocation3], 4294967264 }
 0x3bc   :  { %348 = vsyncpa [#allocation3], 1 }

</bundles_post_ra>
